<compile_context>
chip_gen: v7x
topology: tpu7x:2x2x1
jax: 0.10.0
libtpu: 0.0.40
codegen_flags: <defaults>
</compile_context>

<pallas_src>
import functools

import jax
import jax.numpy as jnp
from jax.experimental import pallas as pl
from jax.experimental.pallas import tpu as pltpu

_HIDDEN = 64
_FUSED = 2 * _HIDDEN   # 128 fused hidden lanes: [critic | actor]
_HEAD = 128            # lane-dense output slab width: [value | mean | pad]


def _round_up(n, m):
    return ((n + m - 1) // m) * m


def _network_kernel(x_ref, w1_ref, b1_ref, w2_ref, b2_ref, wh_ref, bh_ref,
                    out_ref):
    # x / weights arrive as bf16 (MXU-native on v5e/v6e/v7x); accumulate in f32,
    # keep tanh + bias adds in f32 (portable to v5e's f32-only VPU/EUP).
    x = x_ref[...]
    h = jnp.tanh(jnp.dot(x, w1_ref[...], preferred_element_type=jnp.float32)
                 + b1_ref[...])
    h = jnp.tanh(jnp.dot(h.astype(jnp.bfloat16), w2_ref[...],
                         preferred_element_type=jnp.float32)
                 + b2_ref[...])
    # Single lane-dense [tm, 128] bf16 store: col 0 = value, cols 1:1+A = mean.
    out_ref[...] = (jnp.dot(h.astype(jnp.bfloat16), wh_ref[...],
                            preferred_element_type=jnp.float32)
                    + bh_ref[...]).astype(out_ref.dtype)


def pack_params(params):
    """Fuse critic/actor weights into three lane-full matrices.

    Call ONCE per parameter update (hoisted out of the forward hot path).
    Weights are cast to bf16 (MXU operands); biases stay f32.
    """
    H = _HIDDEN
    A = params["actor_wm"].shape[1]
    assert 1 + A <= _HEAD, "num_actions too large for a single 128-lane head slab"
    f32, bf16 = jnp.float32, jnp.bfloat16

    w1 = jnp.concatenate([params["critic_w1"], params["actor_w1"]], axis=1)   # [S, 128]
    b1 = jnp.concatenate([params["critic_b1"], params["actor_b1"]], axis=1)   # [1, 128]

    w2 = jnp.zeros((_FUSED, _FUSED), f32)                                     # [128, 128]
    w2 = w2.at[:H, :H].set(params["critic_w2"])
    w2 = w2.at[H:, H:].set(params["actor_w2"])
    b2 = jnp.concatenate([params["critic_b2"], params["actor_b2"]], axis=1)   # [1, 128]

    wh = jnp.zeros((_FUSED, _HEAD), f32)                                      # [128, 128]
    wh = wh.at[:H, 0:1].set(params["critic_wv"])
    wh = wh.at[H:, 1:1 + A].set(params["actor_wm"])
    bh = jnp.zeros((1, _HEAD), f32)                                           # [1, 128]
    bh = bh.at[:, 0:1].set(params["critic_bv"])
    bh = bh.at[:, 1:1 + A].set(params["actor_bm"])

    # sigma = exp(sigma_log) is independent of x: compute once here.
    sigma = jnp.exp(params["sigma_log"]).astype(f32)                          # [1, A]

    return (w1.astype(bf16), b1.astype(f32),
            w2.astype(bf16), b2.astype(f32),
            wh.astype(bf16), bh.astype(f32),
            sigma)


def _choose_tiling(B, block_batch):
    """Balanced batch tiling: padding bounded to <8 rows per tile."""
    num_tiles = pl.cdiv(B, block_batch)
    # v7x has 2 TensorCores; give the "parallel" batch axis >= 2 grid steps
    # once there is enough work to split (harmless on 1-TC v5e/v6e).
    if B >= 1024:
        num_tiles = max(num_tiles, 2)
    tm = _round_up(pl.cdiv(B, num_tiles), 8)
    return tm, tm * num_tiles, num_tiles


def network_forward(x, packed, *, block_batch=4096, min_pallas_batch=256):
    """Forward of `Network`.

    Args:
      x: [B, num_states] f32.
      packed: output of pack_params(params).
    Returns (state_value [B,1], (mean [B,A], sigma [B,A])).
    """
    w1, b1, w2, b2, wh, bh, sigma = packed
    B, S = x.shape
    A = sigma.shape[1]

    if B < min_pallas_batch:
        # Small-batch fast path: a one-grid-step Pallas launch is pure overhead.
        xb = x.astype(jnp.bfloat16)
        h = jnp.tanh(jnp.dot(xb, w1, preferred_element_type=jnp.float32) + b1)
        h = jnp.tanh(jnp.dot(h.astype(jnp.bfloat16), w2,
                             preferred_element_type=jnp.float32) + b2)
        slab = (jnp.dot(h.astype(jnp.bfloat16), wh,
                        preferred_element_type=jnp.float32) + bh)
    else:
        tm, b_pad, num_tiles = _choose_tiling(B, block_batch)
        xb = x.astype(jnp.bfloat16)            # halves input DMA traffic too
        if b_pad != B:
            xb = jnp.pad(xb, ((0, b_pad - B), (0, 0)))

        const = lambda i: (0, 0)   # weights/biases stay VMEM-resident across grid
        out = pl.pallas_call(
            _network_kernel,
            out_shape=jax.ShapeDtypeStruct((b_pad, _HEAD), jnp.bfloat16),
            grid_spec=pltpu.PrefetchScalarGridSpec(
                num_scalar_prefetch=0,
                grid=(num_tiles,),
                in_specs=[
                    pl.BlockSpec((tm, S), lambda i: (i, 0)),        # x tile (bf16)
                    pl.BlockSpec((S, _FUSED), const),               # W1 (bf16)
                    pl.BlockSpec((1, _FUSED), const),               # b1 (f32)
                    pl.BlockSpec((_FUSED, _FUSED), const),          # W2 block-diag (bf16)
                    pl.BlockSpec((1, _FUSED), const),               # b2 (f32)
                    pl.BlockSpec((_FUSED, _HEAD), const),           # head W block-diag (bf16)
                    pl.BlockSpec((1, _HEAD), const),                # head b (f32)
                ],
                out_specs=pl.BlockSpec((tm, _HEAD), lambda i: (i, 0)),
            ),
            compiler_params=pltpu.CompilerParams(
                dimension_semantics=("parallel",),
            ),
        )(xb, w1, b1, w2, b2, wh, bh)
        slab = out[:B]

    value = slab[:, 0:1].astype(jnp.float32)
    mean = slab[:, 1:1 + A].astype(jnp.float32)
    sigma_b = jnp.broadcast_to(sigma, mean.shape)
    return value, (mean, sigma_b)


def init_params(key, num_states, num_actions, hidden=_HIDDEN):
    """Deterministic synthetic init (uniform, PyTorch-Linear-style fan-in scale)."""
    ks = jax.random.split(key, 12)

    def linear(kw, kb, fan_in, fan_out):
        bound = 1.0 / jnp.sqrt(jnp.float32(fan_in))
        w = jax.random.uniform(kw, (fan_in, fan_out), jnp.float32, -bound, bound)
        b = jax.random.uniform(kb, (1, fan_out), jnp.float32, -bound, bound)
        return w, b

    cw1, cb1 = linear(ks[0], ks[1], num_states, hidden)
    cw2, cb2 = linear(ks[2], ks[3], hidden, hidden)
    cwv, cbv = linear(ks[4], ks[5], hidden, 1)
    aw1, ab1 = linear(ks[6], ks[7], num_states, hidden)
    aw2, ab2 = linear(ks[8], ks[9], hidden, hidden)
    awm, abm = linear(ks[10], ks[11], hidden, num_actions)
    sigma_log = jnp.zeros((1, num_actions), jnp.float32)  # nn.Parameter(zeros)

    return {
        "critic_w1": cw1, "critic_b1": cb1,
        "critic_w2": cw2, "critic_b2": cb2,
        "critic_wv": cwv, "critic_bv": cbv,
        "actor_w1": aw1, "actor_b1": ab1,
        "actor_w2": aw2, "actor_b2": ab2,
        "actor_wm": awm, "actor_bm": abm,
        "sigma_log": sigma_log,
    }


def network_forward_ref(x, p):
    """Pure-JAX f32 reference for correctness check."""
    h = jnp.tanh(x @ p["critic_w1"] + p["critic_b1"])
    h = jnp.tanh(h @ p["critic_w2"] + p["critic_b2"])
    value = h @ p["critic_wv"] + p["critic_bv"]
    a = jnp.tanh(x @ p["actor_w1"] + p["actor_b1"])
    a = jnp.tanh(a @ p["actor_w2"] + p["actor_b2"])
    mean = a @ p["actor_wm"] + p["actor_bm"]
    sigma = jnp.exp(jnp.broadcast_to(p["sigma_log"], mean.shape))
    return value, (mean, sigma)


if __name__ == "__main__":
    num_states, num_actions, batch = 16, 4, 8
    key = jax.random.PRNGKey(0)
    kx, kp = jax.random.split(key)
    x = jax.random.normal(kx, (batch, num_states), jnp.float32)
    params = init_params(kp, num_states, num_actions)

    # Pack (and bf16-cast) the fused weights once, outside the forward hot path.
    packed = pack_params(params)
    packed = jax.block_until_ready(packed)

    # Force the Pallas path at the tiny test batch so the kernel itself runs.
    fwd_kernel = jax.jit(functools.partial(network_forward, min_pallas_batch=0))
    value, (mean, sigma) = fwd_kernel(x, packed)
    jax.block_until_ready((value, mean, sigma))

    value_r, (mean_r, sigma_r) = network_forward_ref(x, params)
    assert value.shape == (batch, 1) and mean.shape == (batch, num_actions)
    # bf16 MXU operands + bf16 output slab -> loosened tolerance vs f32 ref.
    assert jnp.allclose(value, value_r, atol=3e-2, rtol=3e-2)
    assert jnp.allclose(mean, mean_r, atol=3e-2, rtol=3e-2)
    assert jnp.allclose(sigma, sigma_r, atol=1e-6, rtol=1e-6)

    # Also exercise the default entry point (small-batch jnp fast path).
    fwd_default = jax.jit(network_forward)
    v2, (m2, s2) = fwd_default(x, packed)
    jax.block_until_ready((v2, m2, s2))
    assert jnp.allclose(v2, value_r, atol=3e-2, rtol=3e-2)
    assert jnp.allclose(m2, mean_r, atol=3e-2, rtol=3e-2)
    assert jnp.allclose(s2, sigma_r, atol=1e-6, rtol=1e-6)

    print("KERNEL_OK")
</pallas_src>

<mosaic_0001>
module attributes {stable_mosaic.version = 11 : i64} {
  func.func @_network_kernel(%arg0: i32, %arg1: memref<8x16xbf16, #tpu.memory_space<vmem>>, %arg2: memref<16x128xbf16, #tpu.memory_space<vmem>>, %arg3: memref<1x128xf32, #tpu.memory_space<vmem>>, %arg4: memref<128x128xbf16, #tpu.memory_space<vmem>>, %arg5: memref<1x128xf32, #tpu.memory_space<vmem>>, %arg6: memref<128x128xbf16, #tpu.memory_space<vmem>>, %arg7: memref<1x128xf32, #tpu.memory_space<vmem>>, %arg8: memref<8x128xbf16, #tpu.memory_space<vmem>>) attributes {dimension_semantics = [#tpu.dimension_semantics<parallel>], iteration_bounds = array<i64: 1>, scalar_prefetch = 0 : i64, scratch_operands = 0 : i64, tpu.core_type = #tpu.core_type<tc>, window_params = [{transform_indices = @transform_0, window_bounds = array<i64: 8, 16>}, {pipeline_mode = #tpu.pipeline_mode<synchronous>, transform_indices = @transform_1, window_bounds = array<i64: 16, 128>}, {pipeline_mode = #tpu.pipeline_mode<synchronous>, transform_indices = @transform_2, window_bounds = array<i64: 1, 128>}, {pipeline_mode = #tpu.pipeline_mode<synchronous>, transform_indices = @transform_3, window_bounds = array<i64: 128, 128>}, {pipeline_mode = #tpu.pipeline_mode<synchronous>, transform_indices = @transform_4, window_bounds = array<i64: 1, 128>}, {pipeline_mode = #tpu.pipeline_mode<synchronous>, transform_indices = @transform_5, window_bounds = array<i64: 128, 128>}, {pipeline_mode = #tpu.pipeline_mode<synchronous>, transform_indices = @transform_6, window_bounds = array<i64: 1, 128>}, {transform_indices = @transform_7, window_bounds = array<i64: 8, 128>}]} {
    %c0 = arith.constant 0 : index
    %c0_0 = arith.constant 0 : index
    %0 = vector.load %arg1[%c0, %c0_0] : memref<8x16xbf16, #tpu.memory_space<vmem>>, vector<8x16xbf16>
    %c0_1 = arith.constant 0 : index
    %c0_2 = arith.constant 0 : index
    %1 = vector.load %arg2[%c0_1, %c0_2] : memref<16x128xbf16, #tpu.memory_space<vmem>>, vector<16x128xbf16>
    %cst = arith.constant dense<0.000000e+00> : vector<8x128xf32>
    %2 = tpu.matmul %0, %1, %cst {dimension_numbers = #tpu.dot_dimension_numbers<[1], [0], [0], [1], [0, 0, 1, 1], [], []>} : vector<8x16xbf16>, vector<16x128xbf16>, vector<8x128xf32> -> vector<8x128xf32>
    %c0_3 = arith.constant 0 : index
    %c0_4 = arith.constant 0 : index
    %3 = vector.load %arg3[%c0_3, %c0_4] : memref<1x128xf32, #tpu.memory_space<vmem>>, vector<1x128xf32>
    %4 = vector.broadcast %3 : vector<1x128xf32> to vector<8x128xf32>
    %5 = arith.addf %2, %4 : vector<8x128xf32>
    %6 = math.tanh %5 : vector<8x128xf32>
    %7 = arith.truncf %6 : vector<8x128xf32> to vector<8x128xbf16>
    %c0_5 = arith.constant 0 : index
    %c0_6 = arith.constant 0 : index
    %8 = vector.load %arg4[%c0_5, %c0_6] : memref<128x128xbf16, #tpu.memory_space<vmem>>, vector<128x128xbf16>
    %cst_7 = arith.constant dense<0.000000e+00> : vector<8x128xf32>
    %9 = tpu.matmul %7, %8, %cst_7 {dimension_numbers = #tpu.dot_dimension_numbers<[1], [0], [0], [1], [0, 0, 1, 1], [], []>} : vector<8x128xbf16>, vector<128x128xbf16>, vector<8x128xf32> -> vector<8x128xf32>
    %c0_8 = arith.constant 0 : index
    %c0_9 = arith.constant 0 : index
    %10 = vector.load %arg5[%c0_8, %c0_9] : memref<1x128xf32, #tpu.memory_space<vmem>>, vector<1x128xf32>
    %11 = vector.broadcast %10 : vector<1x128xf32> to vector<8x128xf32>
    %12 = arith.addf %9, %11 : vector<8x128xf32>
    %13 = math.tanh %12 : vector<8x128xf32>
    %14 = arith.truncf %13 : vector<8x128xf32> to vector<8x128xbf16>
    %c0_10 = arith.constant 0 : index
    %c0_11 = arith.constant 0 : index
    %15 = vector.load %arg6[%c0_10, %c0_11] : memref<128x128xbf16, #tpu.memory_space<vmem>>, vector<128x128xbf16>
    %cst_12 = arith.constant dense<0.000000e+00> : vector<8x128xf32>
    %16 = tpu.matmul %14, %15, %cst_12 {dimension_numbers = #tpu.dot_dimension_numbers<[1], [0], [0], [1], [0, 0, 1, 1], [], []>} : vector<8x128xbf16>, vector<128x128xbf16>, vector<8x128xf32> -> vector<8x128xf32>
    %c0_13 = arith.constant 0 : index
    %c0_14 = arith.constant 0 : index
    %17 = vector.load %arg7[%c0_13, %c0_14] : memref<1x128xf32, #tpu.memory_space<vmem>>, vector<1x128xf32>
    %18 = vector.broadcast %17 : vector<1x128xf32> to vector<8x128xf32>
    %19 = arith.addf %16, %18 : vector<8x128xf32>
    %20 = arith.truncf %19 : vector<8x128xf32> to vector<8x128xbf16>
    %c0_15 = arith.constant 0 : index
    %c0_16 = arith.constant 0 : index
    %21 = vector.load %arg8[%c0_15, %c0_16] : memref<8x128xbf16, #tpu.memory_space<vmem>>, vector<8x128xbf16>
    tpu.vector_store %arg8[%c0_15, %c0_16], %20 {strides = array<i32>} : memref<8x128xbf16, #tpu.memory_space<vmem>>, vector<8x128xbf16>,
    return
  }
  func.func @transform_0(%arg0: i32) -> (i32, i32) {
    %c0_i32 = arith.constant 0 : i32
    %c0_i32_0 = arith.constant 0 : i32
    return %arg0, %c0_i32 : i32, i32
  }
  func.func @transform_1(%arg0: i32) -> (i32, i32) {
    %c0_i32 = arith.constant 0 : i32
    %c0_i32_0 = arith.constant 0 : i32
    %c0_i32_1 = arith.constant 0 : i32
    return %c0_i32, %c0_i32_0 : i32, i32
  }
  func.func @transform_2(%arg0: i32) -> (i32, i32) {
    %c0_i32 = arith.constant 0 : i32
    %c0_i32_0 = arith.constant 0 : i32
    %c0_i32_1 = arith.constant 0 : i32
    return %c0_i32, %c0_i32_0 : i32, i32
  }
  func.func @transform_3(%arg0: i32) -> (i32, i32) {
    %c0_i32 = arith.constant 0 : i32
    %c0_i32_0 = arith.constant 0 : i32
    %c0_i32_1 = arith.constant 0 : i32
    return %c0_i32, %c0_i32_0 : i32, i32
  }
  func.func @transform_4(%arg0: i32) -> (i32, i32) {
    %c0_i32 = arith.constant 0 : i32
    %c0_i32_0 = arith.constant 0 : i32
    %c0_i32_1 = arith.constant 0 : i32
    return %c0_i32, %c0_i32_0 : i32, i32
  }
  func.func @transform_5(%arg0: i32) -> (i32, i32) {
    %c0_i32 = arith.constant 0 : i32
    %c0_i32_0 = arith.constant 0 : i32
    %c0_i32_1 = arith.constant 0 : i32
    return %c0_i32, %c0_i32_0 : i32, i32
  }
  func.func @transform_6(%arg0: i32) -> (i32, i32) {
    %c0_i32 = arith.constant 0 : i32
    %c0_i32_0 = arith.constant 0 : i32
    %c0_i32_1 = arith.constant 0 : i32
    return %c0_i32, %c0_i32_0 : i32, i32
  }
  func.func @transform_7(%arg0: i32) -> (i32, i32) {
    %c0_i32 = arith.constant 0 : i32
    %c0_i32_0 = arith.constant 0 : i32
    return %arg0, %c0_i32 : i32, i32
  }
}

</mosaic_0001>

<bundles_post_ra>
// kernel: network_forward.1
= control target key start
LH: loop header
LB: loop body
LE: loop exit
PB: predicated region body
PF: predicated region fallthrough
CT: control target
= control target key end

     0   :  { %12 = vsyncpa [#allocation3], 0  ;;  %s619_s0 = inlined_call_operand.vmem [shape: bf16[8,16], index: 0, kind: input, shape index: {}]   ;;  %s620_s1 = inlined_call_operand.vmem [shape: bf16[16,128], index: 1, kind: input, shape index: {}]   ;;  %s621_s2 = inlined_call_operand.vmem [shape: f32[1,128], index: 2, kind: input, shape index: {}]   ;;  %s622_s3 = inlined_call_operand.hbm [shape: bf16[128,128], index: 3, kind: input, shape index: {}]   ;;  %s623_s4 = inlined_call_operand.vmem [shape: f32[1,128], index: 4, kind: input, shape index: {}]   ;;  %s624_s5 = inlined_call_operand.hbm [shape: bf16[128,128], index: 5, kind: input, shape index: {}]   ;;  %s625_s6 = inlined_call_operand.vmem [shape: f32[1,128], index: 6, kind: input, shape index: {}]   ;;  %s626_s7 = inlined_call_operand.vmem [shape: bf16[8,128], index: 7, kind: output, shape index: {}]  }
   0x1   :  { %13 = vsyncpa [#allocation5], 0  ;;  %s511_s24 = smov [#allocation2]   ;;  %s463_s28 = scalar_lea.hbm %s622_s3, 1024 }
   0x2   :  { %s25_s25 = sshll.u32 %s511_s24, 4  ;;  %p464_p0 = scmp.ne.s32.totalorder %s622_s3, %s463_s28  ;;  %s26_s25 = int_to_ptr.vmem [resolvable:$true] %s25_s25 }
   0x3   :  { %p467_p1 = scmp.lt.u32.totalorder %s463_s28, %s622_s3 }
   0x5   :  { %p469_p2 = pnand %p467_p1, %p464_p0 }
   0x7   :  { %472 = shalt.err (!%p469_p2)
}
   0x8   :  { %s473_s10 = scalar_lea.vmem %s26_s25, 1024  ;;  %p478_p4 = scmp.lt.s32.totalorder %s26_s25, %s26_s25 }
   0x9   :  { %p474_p3 = scmp.ne.s32.totalorder %s26_s25, %s473_s10  ;;  %p479_p5 = scmp.lt.s32.totalorder %s473_s10, %s473_s10 }
   0xb   :  { %p480_p6 = por %p479_p5, %p478_p4 }
   0xd   :  { %p481_p7 = pnand %p480_p6, %p474_p3 }
   0xf   :  { %484 = shalt.err (!%p481_p7)
}
  0x10   :  { %s512_s11 = smov 64   ;;  %s513_s12 = smov 4  }
  0x11   :  { %31 = dma.hbm_to_vmem [thread:$0]  %s622_s3, 1024, %s26_s25, [#allocation3], %s512_s11, %s512_s11, %s513_s12  }
  0x12   :  { %s514_s15 = smov [#allocation4]   ;;  %s485_s19 = scalar_lea.hbm %s624_s5, 1024 }
  0x13   :  { %s39_s16 = sshll.u32 %s514_s15, 4  ;;  %p486_p8 = scmp.ne.s32.totalorder %s624_s5, %s485_s19  ;;  %s40_s16 = int_to_ptr.vmem [resolvable:$true] %s39_s16 }
  0x14   :  { %p489_p9 = scmp.lt.u32.totalorder %s485_s19, %s624_s5 }
  0x16   :  { %p491_p10 = pnand %p489_p9, %p486_p8 }
  0x18   :  { %494 = shalt.err (!%p491_p10)
}
  0x19   :  { %s495_s24 = scalar_lea.vmem %s40_s16, 1024  ;;  %p500_p12 = scmp.lt.s32.totalorder %s40_s16, %s40_s16 }
  0x1a   :  { %p496_p11 = scmp.ne.s32.totalorder %s40_s16, %s495_s24  ;;  %p501_p13 = scmp.lt.s32.totalorder %s495_s24, %s495_s24 }
  0x1c   :  { %p502_p0 = por %p501_p13, %p500_p12 }
  0x1e   :  { %p503_p1 = pnand %p502_p0, %p496_p11 }
  0x20   :  { %506 = shalt.err (!%p503_p1)
}
  0x21   :  { %45 = dma.hbm_to_vmem [thread:$0]  %s624_s5, 1024, %s40_s16, [#allocation5], %s512_s11, %s512_s11, %s513_s12  }
  0x22   :  { %507 = dma.done.wait [#allocation3], 1024  }
  0x23   :  { %508 = vsyncadd [#allocation3], 4294966272 }
  0x24   :  { %509 = dma.done.wait [#allocation5], 1024  }
  0x25   :  { %510 = vsyncadd [#allocation5], 4294966272  ;;  %v515_v0 = vmov 0.0   ;;  %vm516_vm0 = vmmov 0   ;;  %v442_v1 = vld [vmem:[%s620_s1] sm:$0xff]   ;;  %vm71_vm1 = vcmask 130048  }
  0x26   :  { %390 = vmatprep.subr.bf16.mxu0 %v515_v0  ;;  %392 = vmatprep.mubr.msk.bf16.mxu0 %vm516_vm0, %v515_v0  ;;  %v55_v2 = vld [vmem:[%s619_s0] sm:$0xf]  ;;  %v444_v4 = vld [vmem:[#allocation2 + $0x8] sm:$0xff]   ;;  %v445_v5 = vld [vmem:[#allocation2 + $0x10] sm:$0xff]  }
  0x27   :  { %396 = vmatprep.subr.bf16.mxu1 %v515_v0  ;;  %412 = vmatprep.mubr.msk.bf16.mxu1 %vm516_vm0, %v515_v0  ;;  %v443_v3 = vld [vmem:[#allocation2] sm:$0xff]   ;;  %v446_v6 = vld [vmem:[#allocation2 + $0x18] sm:$0xff]   ;;  %v448_v8 = vld [vmem:[#allocation2 + $0x28] sm:$0xff]  }
  0x28   :  { %391 = vmatpush3.bf16.msra.mxu0 %v442_v1  ;;  %397 = vmatpush3.bf16.msra.mxu1 %v443_v3  ;;  %v447_v7 = vld [vmem:[#allocation2 + $0x20] sm:$0xff]   ;;  %v449_v9 = vld [vmem:[#allocation2 + $0x30] sm:$0xff]   ;;  %v450_v10 = vld [vmem:[#allocation2 + $0x38] sm:$0xff]  }
  0x29   :  { %416 = vmatprep.subr.bf16.mxu0 %v515_v0  ;;  %398 = vmatprep.subr.bf16.mxu1 %v515_v0  ;;  %v451_v11 = vld [vmem:[#allocation4] sm:$0xff]   ;;  %v452_v12 = vld [vmem:[#allocation4 + $0x8] sm:$0xff]   ;;  %v453_v13 = vld [vmem:[#allocation4 + $0x10] sm:$0xff]  }
  0x2a   :  { %v454_v14 = vld [vmem:[#allocation4 + $0x18] sm:$0xff]   ;;  %v349_v15 = vld [vmem:[%s621_s2] ss:$0 sm:$0xff]  ;;  %v456_v24 = vld [vmem:[#allocation4 + $0x28] sm:$0xff]  }
  0x2b   :  { %393 = vmatmul.mubr.msk.bf16.vlgmr.msra.gmra.mrb[0].mxu0 %vm71_vm1, %v55_v2  ;;  %v455_v23 = vld [vmem:[#allocation4 + $0x20] sm:$0xff]   ;;  %v457_v25 = vld [vmem:[#allocation4 + $0x30] sm:$0xff]   ;;  %v458_v26 = vld [vmem:[#allocation4 + $0x38] sm:$0xff]  }
  0x2c   :  { %432 = vmatprep.mubr.msk.bf16.mxu0 %vm516_vm0, %v515_v0  ;;  %399 = vmatpush3.bf16.msra.mxu1 %v444_v4  ;;  %v352_v27 = vld [vmem:[%s623_s4] ss:$0 sm:$0xff] }
  0x2d   :  { %400 = vmatprep.subr.bf16.mxu1 %v515_v0  ;;  %417 = vmatpush3.bf16.msra.mxu0 %v451_v11  ;;  %v361_v35 = vld [vmem:[%s625_s6] ss:$0 sm:$0xff] }
  0x2e   :  { %418 = vmatprep.subr.bf16.mxu0 %v515_v0 }
  0x30   :  { %401 = vmatpush3.bf16.msra.mxu1 %v445_v5 }
  0x31   :  { %402 = vmatprep.subr.bf16.mxu1 %v515_v0  ;;  %419 = vmatpush3.bf16.msra.mxu0 %v452_v12 }
  0x32   :  { %420 = vmatprep.subr.bf16.mxu0 %v515_v0 }
  0x34   :  { %403 = vmatpush3.bf16.msra.mxu1 %v446_v6 }
  0x35   :  { %404 = vmatprep.subr.bf16.mxu1 %v515_v0  ;;  %421 = vmatpush3.bf16.msra.mxu0 %v453_v13 }
  0x36   :  { %422 = vmatprep.subr.bf16.mxu0 %v515_v0 }
  0x38   :  { %405 = vmatpush3.bf16.msra.mxu1 %v447_v7 }
  0x39   :  { %406 = vmatprep.subr.bf16.mxu1 %v515_v0  ;;  %423 = vmatpush3.bf16.msra.mxu0 %v454_v14 }
  0x3a   :  { %424 = vmatprep.subr.bf16.mxu0 %v515_v0 }
  0x3c   :  { %407 = vmatpush3.bf16.msra.mxu1 %v448_v8 }
  0x3d   :  { %408 = vmatprep.subr.bf16.mxu1 %v515_v0  ;;  %425 = vmatpush3.bf16.msra.mxu0 %v455_v23 }
  0x3e   :  { %426 = vmatprep.subr.bf16.mxu0 %v515_v0 }
  0x40   :  { %409 = vmatpush3.bf16.msra.mxu1 %v449_v9 }
  0x41   :  { %410 = vmatprep.subr.bf16.mxu1 %v515_v0  ;;  %427 = vmatpush3.bf16.msra.mxu0 %v456_v24 }
  0x42   :  { %428 = vmatprep.subr.bf16.mxu0 %v515_v0 }
  0x44   :  { %411 = vmatpush3.bf16.msra.mxu1 %v450_v10 }
  0x45   :  { %429 = vmatpush3.bf16.msra.mxu0 %v457_v25 }
  0x46   :  { %430 = vmatprep.subr.bf16.mxu0 %v515_v0 }
  0x49   :  { %431 = vmatpush3.bf16.msra.mxu0 %v458_v26 }
  0xfe   :  { %v109_v16 = vpop.f32.mrb[0].mxu0 }
  0xff   :  { %v110_v17 = vadd.f32 %v349_v15, %v109_v16  ;;  %v394_v18 = vpop.f32.mrb[1].mxu0 }
 0x100   :  { %v112_v19 = vpop.f32.mrb[2].mxu0 }
 0x101   :  { %459 = vtanh.f32 %v110_v17  ;;  %v395_v20 = vpop.f32.mrb[3].mxu0 }
 0x10b   :  { %v460_v21 = vpop.eup %459 }
 0x10c   :  { %v116_v22 = vpack.c.bf16 %v460_v21, %v460_v21 }
 0x10e   :  { %413 = vmatmul.mubr.bf16.vlgmr.msra.gmra.mrb[0].mxu1 %v116_v22 }
 0x1e1   :  { %v222_v28 = vpop.f32.mrb[0].mxu1 }
 0x1e2   :  { %v223_v29 = vadd.f32 %v352_v27, %v222_v28  ;;  %v414_v30 = vpop.f32.mrb[1].mxu1 }
 0x1e3   :  { %v225_v31 = vpop.f32.mrb[2].mxu1 }
 0x1e4   :  { %461 = vtanh.f32 %v223_v29  ;;  %v415_v32 = vpop.f32.mrb[3].mxu1 }
 0x1ee   :  { %v462_v33 = vpop.eup %461 }
 0x1ef   :  { %v229_v34 = vpack.c.bf16 %v462_v33, %v462_v33 }
 0x1f1   :  { %433 = vmatmul.mubr.bf16.vlgmr.msra.gmra.mrb[4].mxu0 %v229_v34 }
 0x2c4   :  { %v335_v36 = vpop.f32.mrb[4].mxu0 }
 0x2c5   :  { %v336_v37 = vadd.f32 %v361_v35, %v335_v36  ;;  %v434_v38 = vpop.f32.mrb[5].mxu0 }
 0x2c6   :  { %v338_v39 = vpop.f32.mrb[6].mxu0 }
 0x2c7   :  { %v341_v40 = vpack.c.bf16 %v336_v37, %v336_v37  ;;  %v435_v41 = vpop.f32.mrb[7].mxu0 }
 0x2c9   :  { %342 = vst [vmem:[%s626_s7] sm:$0xf] %v341_v40 }
 0x2ca   :  { %347 = vsyncpa [#allocation3], 1 }
 0x2cb   :  { %348 = vsyncpa [#allocation5], 1 }

</bundles_post_ra>
